<compile_context>
chip_gen: v7x
topology: tpu7x:2x2x1
jax: 0.10.0
libtpu: 0.0.40
codegen_flags: <defaults>
</compile_context>

<pallas_src>
import functools

import jax
import jax.numpy as jnp
from jax import lax
from jax.experimental import pallas as pl
from jax.experimental.pallas import tpu as pltpu

EPS = 1e-4
LANE = 128
MIB = 1024 * 1024


def _round_up(a, b):
    return ((a + b - 1) // b) * b


def _vmem_capacity_bytes():
    try:
        info = pltpu.get_tpu_info()
        for name in ("vmem_capacity_bytes", "vmem_size_bytes", "vmem_bytes"):
            v = getattr(info, name, None)
            if v:
                return int(v)
    except Exception:
        pass
    return 64 * MIB  # conservative fallback (safe on every generation)


def _layernorm_affine(x, g, b, d_actual, d_padded):
    """f32 LayerNorm + affine over the last axis; padded lanes of x are zero."""
    xf = x.astype(jnp.float32)
    inv_d = jnp.float32(1.0 / d_actual)
    mean = jnp.sum(xf, axis=-1, keepdims=True) * inv_d
    centered = xf - mean
    sq = jnp.sum(centered * centered, axis=-1, keepdims=True)
    if d_actual != d_padded:
        # Padded lanes of x are zero -> `centered` there equals -mean; remove
        # their contribution analytically instead of masking (saves one full
        # (tm, Dp) VPU pass and an f32 temporary).
        sq = sq - jnp.float32(d_padded - d_actual) * (mean * mean)
    var = sq * inv_d
    xn = centered * lax.rsqrt(var + EPS)
    # gamma/beta are zero-padded, so padded lanes come out exactly zero and
    # contribute nothing to the matmul (weight rows there are also zero).
    return xn * g.astype(jnp.float32) + b.astype(jnp.float32)


def _prenorm_resident_kernel(x_ref, g_ref, b_ref, w_ref, fb_ref, o_ref,
                             *, d_actual, d_padded):
    xn = _layernorm_affine(x_ref[...], g_ref[...], b_ref[...],
                           d_actual, d_padded)
    y = jnp.dot(xn.astype(w_ref.dtype), w_ref[...],
                preferred_element_type=jnp.float32)
    o_ref[...] = (y + fb_ref[...].astype(jnp.float32)).astype(o_ref.dtype)


def _prenorm_coltile_kernel(x_ref, g_ref, b_ref, w_ref, fb_ref, o_ref, xn_ref,
                            *, d_actual, d_padded):
    # Column axis (j) is innermost: compute the LayerNorm once per row tile.
    @pl.when(pl.program_id(1) == 0)
    def _():
        xn = _layernorm_affine(x_ref[...], g_ref[...], b_ref[...],
                               d_actual, d_padded)
        xn_ref[...] = xn.astype(xn_ref.dtype)

    y = jnp.dot(xn_ref[...], w_ref[...], preferred_element_type=jnp.float32)
    o_ref[...] = (y + fb_ref[...].astype(jnp.float32)).astype(o_ref.dtype)


def _resident_need(tm, dp, x_item, out_item, w_item):
    f32 = 4
    return (2 * tm * dp * x_item        # x tile, double-buffered
            + 2 * tm * dp * out_item    # out tile, double-buffered
            + dp * dp * w_item          # fn weight, single-buffered
            + 3 * dp * f32              # gamma / beta / fn bias, single-buffered
            + 4 * tm * dp * f32)        # f32 temporaries (x, centered, xn, y)


def _coltile_need(tm, tn, dp, x_item, out_item, w_item):
    f32 = 4
    return (2 * tm * dp * x_item            # x tile, double-buffered
            + 2 * tm * tn * out_item        # out tile, double-buffered
            + 2 * dp * tn * w_item          # weight column block, double-buffered
            + 2 * tn * f32 + 2 * dp * f32   # fn-bias blocks + gamma/beta
            + tm * dp * w_item              # xn scratch (matmul input dtype)
            + 3 * tm * dp * f32             # LayerNorm f32 temporaries
            + tm * tn * f32)                # f32 matmul result


def prenorm(x, gamma, beta, w_fn, b_fn, *, tm=256, col_tile=None,
            mxu_dtype=None):
    """Fused y = Linear(LayerNorm(x)).

    x: (B, N, D); gamma/beta: (D,); w_fn: (D_in, D_out) = (D, D); b_fn: (D,).
    mxu_dtype: optionally cast the Linear weight (and hence the matmul input)
      to this dtype (e.g. jnp.bfloat16) for the fast MXU path.
    col_tile: force the weight-streaming path with this output-column tile
      size (None = pick automatically based on the VMEM budget).
    """
    B, N, D = x.shape
    M = B * N
    orig_dtype = x.dtype

    if mxu_dtype is not None:
        w_fn = w_fn.astype(mxu_dtype)

    Dp = _round_up(D, LANE)

    x2 = x.reshape(M, D)
    if Dp != D:
        # Lane padding only (keeps loads/stores lane-dense and the MXU columns
        # full).  The row axis is never padded: ragged row blocks are handled
        # by the cdiv grid, so there is no extra full-tensor HBM pass on M.
        x2 = jnp.pad(x2, ((0, 0), (0, Dp - D)))
        gamma = jnp.pad(gamma, (0, Dp - D))
        beta = jnp.pad(beta, (0, Dp - D))
        w_fn = jnp.pad(w_fn, ((0, Dp - D), (0, Dp - D)))
        b_fn = jnp.pad(b_fn, (0, Dp - D))
    g2 = gamma.reshape(1, Dp)
    b2 = beta.reshape(1, Dp)
    fb2 = b_fn.reshape(1, Dp)
    w2 = w_fn

    x_item = jnp.dtype(x2.dtype).itemsize
    out_item = jnp.dtype(orig_dtype).itemsize
    w_item = jnp.dtype(w2.dtype).itemsize

    # Leave ~20% headroom below physical VMEM for compiler scratch.
    cap = (_vmem_capacity_bytes() * 4) // 5

    # --- row tile selection -------------------------------------------------
    tm_eff = tm
    # v5e/v6e (128 MiB VMEM): bigger row tile amortizes per-step overhead.
    if (tm_eff == 256 and cap > 72 * MIB and M >= 1024 and
            _resident_need(512, Dp, x_item, out_item, w_item) <= cap):
        tm_eff = 512
    # Small M: keep >= 2 grid steps so both v7x TensorCores / pipeline stages
    # get work.
    if M > 128 and pl.cdiv(M, tm_eff) < 2:
        tm_eff = 128
    tm_eff = max(8, min(tm_eff, _round_up(M, 8)))

    use_col = (col_tile is not None or
               _resident_need(tm_eff, Dp, x_item, out_item, w_item) > cap)

    if not use_col:
        # ---- resident-weight path: 1-D grid over row tiles ------------------
        need = _resident_need(tm_eff, Dp, x_item, out_item, w_item)
        vmem_limit = int(min(cap, max(32 * MIB, need + need // 4)))
        kernel = functools.partial(_prenorm_resident_kernel,
                                   d_actual=D, d_padded=Dp)
        out = pl.pallas_call(
            kernel,
            out_shape=jax.ShapeDtypeStruct((M, Dp), orig_dtype),
            grid_spec=pltpu.PrefetchScalarGridSpec(
                num_scalar_prefetch=0,
                grid=(pl.cdiv(M, tm_eff),),
                in_specs=[
                    pl.BlockSpec((tm_eff, Dp), lambda i: (i, 0)),
                    pl.BlockSpec((1, Dp), lambda i: (0, 0),
                                 pipeline_mode=pl.Buffered(1)),   # gamma
                    pl.BlockSpec((1, Dp), lambda i: (0, 0),
                                 pipeline_mode=pl.Buffered(1)),   # beta
                    pl.BlockSpec((Dp, Dp), lambda i: (0, 0),
                                 pipeline_mode=pl.Buffered(1)),   # fn weight
                    pl.BlockSpec((1, Dp), lambda i: (0, 0),
                                 pipeline_mode=pl.Buffered(1)),   # fn bias
                ],
                out_specs=pl.BlockSpec((tm_eff, Dp), lambda i: (i, 0)),
            ),
            compiler_params=pltpu.CompilerParams(
                dimension_semantics=("parallel",),
                vmem_limit_bytes=vmem_limit,
            ),
        )(x2, g2, b2, w2, fb2)
    else:
        # ---- weight-streaming path: 2-D grid (rows parallel, cols inner) ----
        tn = int(col_tile) if col_tile is not None else 512
        tn = max(LANE, min(_round_up(tn, LANE), Dp))
        while (_coltile_need(tm_eff, tn, Dp, x_item, out_item, w_item) > cap
               and tm_eff > 64):
            tm_eff //= 2
        tm_eff = max(8, (tm_eff // 8) * 8)
        need = _coltile_need(tm_eff, tn, Dp, x_item, out_item, w_item)
        vmem_limit = int(min(cap, max(32 * MIB, need + need // 4)))
        kernel = functools.partial(_prenorm_coltile_kernel,
                                   d_actual=D, d_padded=Dp)
        out = pl.pallas_call(
            kernel,
            out_shape=jax.ShapeDtypeStruct((M, Dp), orig_dtype),
            grid_spec=pltpu.PrefetchScalarGridSpec(
                num_scalar_prefetch=0,
                grid=(pl.cdiv(M, tm_eff), pl.cdiv(Dp, tn)),
                in_specs=[
                    pl.BlockSpec((tm_eff, Dp), lambda i, j: (i, 0)),  # x rows
                    pl.BlockSpec((1, Dp), lambda i, j: (0, 0),
                                 pipeline_mode=pl.Buffered(1)),       # gamma
                    pl.BlockSpec((1, Dp), lambda i, j: (0, 0),
                                 pipeline_mode=pl.Buffered(1)),       # beta
                    pl.BlockSpec((Dp, tn), lambda i, j: (0, j)),      # W cols
                    pl.BlockSpec((1, tn), lambda i, j: (0, j)),       # fn bias
                ],
                out_specs=pl.BlockSpec((tm_eff, tn), lambda i, j: (i, j)),
                scratch_shapes=[pltpu.VMEM((tm_eff, Dp), w2.dtype)],  # xn cache
            ),
            compiler_params=pltpu.CompilerParams(
                dimension_semantics=("parallel", "arbitrary"),
                vmem_limit_bytes=vmem_limit,
            ),
        )(x2, g2, b2, w2, fb2)

    if Dp != D:
        out = out[:, :D]
    return out.reshape(B, N, D)


def prenorm_ref(x, gamma, beta, w_fn, b_fn):
    xf = x.astype(jnp.float32)
    mean = jnp.mean(xf, axis=-1, keepdims=True)
    var = jnp.mean((xf - mean) ** 2, axis=-1, keepdims=True)
    xn = (xf - mean) / jnp.sqrt(var + EPS)
    xn = xn * gamma.astype(jnp.float32) + beta.astype(jnp.float32)
    return (xn @ w_fn.astype(jnp.float32)
            + b_fn.astype(jnp.float32)).astype(x.dtype)


if __name__ == "__main__":
    B, N, D = 2, 8, 32
    key = jax.random.PRNGKey(0)
    kx, kw, kb = jax.random.split(key, 3)

    x = jax.random.normal(kx, (B, N, D), dtype=jnp.float32)

    # LayerNorm params: PyTorch default init (weight=1, bias=0).
    gamma = jnp.ones((D,), dtype=jnp.float32)
    beta = jnp.zeros((D,), dtype=jnp.float32)

    # fn = Linear(D, D) stored as (in, out).
    # TODO(synk): `fn` is an arbitrary sub-module in the original code; a
    # Linear(dim, dim) stand-in is used here as a representative hot path.
    w_fn = jax.random.normal(kw, (D, D), dtype=jnp.float32) * 0.05
    b_fn = jax.random.normal(kb, (D,), dtype=jnp.float32) * 0.01

    y_ref = prenorm_ref(x, gamma, beta, w_fn, b_fn)

    # Resident-weight path (auto-selected at this size).
    y = jax.block_until_ready(prenorm(x, gamma, beta, w_fn, b_fn))
    assert jnp.allclose(y, y_ref, atol=1e-4, rtol=1e-4), "resident path mismatch"

    # Column-tiled (weight-streaming) path, forced for compile/correctness coverage.
    y2 = jax.block_until_ready(prenorm(x, gamma, beta, w_fn, b_fn, col_tile=128))
    assert jnp.allclose(y2, y_ref, atol=1e-4, rtol=1e-4), "col-tiled path mismatch"

    print("KERNEL_OK")
</pallas_src>

<mosaic_0001>
module attributes {stable_mosaic.version = 11 : i64} {
  func.func @_prenorm_resident_kernel(%arg0: i32, %arg1: memref<16x128xf32, #tpu.memory_space<vmem>>, %arg2: memref<1x128xf32, #tpu.memory_space<vmem>>, %arg3: memref<1x128xf32, #tpu.memory_space<vmem>>, %arg4: memref<128x128xf32, #tpu.memory_space<vmem>>, %arg5: memref<1x128xf32, #tpu.memory_space<vmem>>, %arg6: memref<16x128xf32, #tpu.memory_space<vmem>>) attributes {dimension_semantics = [#tpu.dimension_semantics<parallel>], iteration_bounds = array<i64: 1>, scalar_prefetch = 0 : i64, scratch_operands = 0 : i64, tpu.core_type = #tpu.core_type<tc>, window_params = [{transform_indices = @transform_0, window_bounds = array<i64: 16, 128>}, {pipeline_mode = #tpu.pipeline_mode<synchronous>, transform_indices = @transform_1, window_bounds = array<i64: 1, 128>}, {pipeline_mode = #tpu.pipeline_mode<synchronous>, transform_indices = @transform_2, window_bounds = array<i64: 1, 128>}, {pipeline_mode = #tpu.pipeline_mode<synchronous>, transform_indices = @transform_3, window_bounds = array<i64: 128, 128>}, {pipeline_mode = #tpu.pipeline_mode<synchronous>, transform_indices = @transform_4, window_bounds = array<i64: 1, 128>}, {transform_indices = @transform_5, window_bounds = array<i64: 16, 128>}]} {
    %c0 = arith.constant 0 : index
    %c0_0 = arith.constant 0 : index
    %0 = vector.load %arg1[%c0, %c0_0] : memref<16x128xf32, #tpu.memory_space<vmem>>, vector<16x128xf32>
    %c0_1 = arith.constant 0 : index
    %c0_2 = arith.constant 0 : index
    %1 = vector.load %arg2[%c0_1, %c0_2] : memref<1x128xf32, #tpu.memory_space<vmem>>, vector<1x128xf32>
    %c0_3 = arith.constant 0 : index
    %c0_4 = arith.constant 0 : index
    %2 = vector.load %arg3[%c0_3, %c0_4] : memref<1x128xf32, #tpu.memory_space<vmem>>, vector<1x128xf32>
    %cst = arith.constant dense<0.000000e+00> : vector<16xf32>
    %3 = vector.multi_reduction <add>, %0, %cst [1] : vector<16x128xf32> to vector<16xf32>
    %4 = vector.shape_cast %3 : vector<16xf32> to vector<16x1xf32>
    %cst_5 = arith.constant 3.125000e-02 : f32
    %5 = vector.broadcast %cst_5 : f32 to vector<16x1xf32>
    %6 = arith.mulf %4, %5 : vector<16x1xf32>
    %7 = vector.broadcast %6 : vector<16x1xf32> to vector<16x128xf32>
    %8 = arith.subf %0, %7 : vector<16x128xf32>
    %9 = arith.mulf %8, %8 : vector<16x128xf32>
    %cst_6 = arith.constant dense<0.000000e+00> : vector<16xf32>
    %10 = vector.multi_reduction <add>, %9, %cst_6 [1] : vector<16x128xf32> to vector<16xf32>
    %11 = vector.shape_cast %10 : vector<16xf32> to vector<16x1xf32>
    %12 = arith.mulf %6, %6 : vector<16x1xf32>
    %cst_7 = arith.constant 9.600000e+01 : f32
    %13 = vector.broadcast %cst_7 : f32 to vector<16x1xf32>
    %14 = arith.mulf %13, %12 : vector<16x1xf32>
    %15 = arith.subf %11, %14 : vector<16x1xf32>
    %cst_8 = arith.constant 3.125000e-02 : f32
    %16 = vector.broadcast %cst_8 : f32 to vector<16x1xf32>
    %17 = arith.mulf %15, %16 : vector<16x1xf32>
    %cst_9 = arith.constant 9.99999974E-5 : f32
    %18 = vector.broadcast %cst_9 : f32 to vector<16x1xf32>
    %19 = arith.addf %17, %18 : vector<16x1xf32>
    %20 = math.rsqrt %19 : vector<16x1xf32>
    %21 = vector.broadcast %20 : vector<16x1xf32> to vector<16x128xf32>
    %22 = arith.mulf %8, %21 : vector<16x128xf32>
    %23 = vector.broadcast %1 : vector<1x128xf32> to vector<16x128xf32>
    %24 = arith.mulf %22, %23 : vector<16x128xf32>
    %25 = vector.broadcast %2 : vector<1x128xf32> to vector<16x128xf32>
    %26 = arith.addf %24, %25 : vector<16x128xf32>
    %c0_10 = arith.constant 0 : index
    %c0_11 = arith.constant 0 : index
    %27 = vector.load %arg4[%c0_10, %c0_11] : memref<128x128xf32, #tpu.memory_space<vmem>>, vector<128x128xf32>
    %cst_12 = arith.constant dense<0.000000e+00> : vector<16x128xf32>
    %28 = tpu.matmul %26, %27, %cst_12 {dimension_numbers = #tpu.dot_dimension_numbers<[1], [0], [0], [1], [0, 0, 1, 1], [], []>} : vector<16x128xf32>, vector<128x128xf32>, vector<16x128xf32> -> vector<16x128xf32>
    %c0_13 = arith.constant 0 : index
    %c0_14 = arith.constant 0 : index
    %29 = vector.load %arg5[%c0_13, %c0_14] : memref<1x128xf32, #tpu.memory_space<vmem>>, vector<1x128xf32>
    %30 = vector.broadcast %29 : vector<1x128xf32> to vector<16x128xf32>
    %31 = arith.addf %28, %30 : vector<16x128xf32>
    %c0_15 = arith.constant 0 : index
    %c0_16 = arith.constant 0 : index
    %32 = vector.load %arg6[%c0_15, %c0_16] : memref<16x128xf32, #tpu.memory_space<vmem>>, vector<16x128xf32>
    tpu.vector_store %arg6[%c0_15, %c0_16], %31 {strides = array<i32>} : memref<16x128xf32, #tpu.memory_space<vmem>>, vector<16x128xf32>,
    return
  }
  func.func @transform_0(%arg0: i32) -> (i32, i32) {
    %c0_i32 = arith.constant 0 : i32
    %c0_i32_0 = arith.constant 0 : i32
    return %arg0, %c0_i32 : i32, i32
  }
  func.func @transform_1(%arg0: i32) -> (i32, i32) {
    %c0_i32 = arith.constant 0 : i32
    %c0_i32_0 = arith.constant 0 : i32
    %c0_i32_1 = arith.constant 0 : i32
    return %c0_i32, %c0_i32_0 : i32, i32
  }
  func.func @transform_2(%arg0: i32) -> (i32, i32) {
    %c0_i32 = arith.constant 0 : i32
    %c0_i32_0 = arith.constant 0 : i32
    %c0_i32_1 = arith.constant 0 : i32
    return %c0_i32, %c0_i32_0 : i32, i32
  }
  func.func @transform_3(%arg0: i32) -> (i32, i32) {
    %c0_i32 = arith.constant 0 : i32
    %c0_i32_0 = arith.constant 0 : i32
    %c0_i32_1 = arith.constant 0 : i32
    return %c0_i32, %c0_i32_0 : i32, i32
  }
  func.func @transform_4(%arg0: i32) -> (i32, i32) {
    %c0_i32 = arith.constant 0 : i32
    %c0_i32_0 = arith.constant 0 : i32
    %c0_i32_1 = arith.constant 0 : i32
    return %c0_i32, %c0_i32_0 : i32, i32
  }
  func.func @transform_5(%arg0: i32) -> (i32, i32) {
    %c0_i32 = arith.constant 0 : i32
    %c0_i32_0 = arith.constant 0 : i32
    return %arg0, %c0_i32 : i32, i32
  }
}

</mosaic_0001>

<bundles_post_ra>
// kernel: tpu_custom_call.1
= control target key start
LH: loop header
LB: loop body
LE: loop exit
PB: predicated region body
PF: predicated region fallthrough
CT: control target
= control target key end

     0   :  { %10 = vsyncpa [#allocation3], 0  ;;  %s473_s0 = inlined_call_operand.hbm [shape: f32[16,128], index: 0, kind: input, shape index: {}]   ;;  %s474_s1 = inlined_call_operand.vmem [shape: f32[1,128], index: 1, kind: input, shape index: {}]   ;;  %s475_s2 = inlined_call_operand.vmem [shape: f32[1,128], index: 2, kind: input, shape index: {}]   ;;  %s476_s3 = inlined_call_operand.hbm [shape: f32[128,128], index: 3, kind: input, shape index: {}]   ;;  %s477_s4 = inlined_call_operand.vmem [shape: f32[1,128], index: 4, kind: input, shape index: {}]   ;;  %s478_s5 = inlined_call_operand.hbm [shape: f32[16,128], index: 5, kind: output, shape index: {}]  }
   0x1   :  { %11 = vsyncpa [#allocation6], 0 }
   0x2   :  { %12 = vsyncpa [#allocation4], 0  ;;  %s384_s18 = smov [#allocation2]   ;;  %s312_s22 = scalar_lea.hbm %s473_s0, 256 }
   0x3   :  { %s18_s19 = sshll.u32 %s384_s18, 4  ;;  %p313_p0 = scmp.ne.s32.totalorder %s473_s0, %s312_s22  ;;  %s19_s19 = int_to_ptr.vmem [resolvable:$true] %s18_s19 }
   0x4   :  { %p316_p1 = scmp.lt.u32.totalorder %s312_s22, %s473_s0 }
   0x6   :  { %p318_p2 = pnand %p316_p1, %p313_p0 }
   0x8   :  { %321 = shalt.err (!%p318_p2)
}
   0x9   :  { %s322_s27 = scalar_lea.vmem %s19_s19, 256  ;;  %p327_p4 = scmp.lt.s32.totalorder %s19_s19, %s19_s19 }
   0xa   :  { %p323_p3 = scmp.ne.s32.totalorder %s19_s19, %s322_s27  ;;  %p328_p5 = scmp.lt.s32.totalorder %s322_s27, %s322_s27 }
   0xc   :  { %p329_p6 = por %p328_p5, %p327_p4 }
   0xe   :  { %p330_p7 = pnand %p329_p6, %p323_p3 }
  0x10   :  { %333 = shalt.err (!%p330_p7)
}
  0x11   :  { %s385_s28 = smov 128   ;;  %s386_s29 = smov 8  }
  0x12   :  { %24 = dma.hbm_to_vmem [thread:$0]  %s473_s0, 256, %s19_s19, [#allocation3], %s385_s28, %s385_s28, %s386_s29  }
  0x13   :  { %s387_s7 = smov [#allocation5]   ;;  %s334_s11 = scalar_lea.hbm %s476_s3, 2048 }
  0x14   :  { %s34_s8 = sshll.u32 %s387_s7, 4  ;;  %p335_p8 = scmp.ne.s32.totalorder %s476_s3, %s334_s11  ;;  %s35_s8 = int_to_ptr.vmem [resolvable:$true] %s34_s8 }
  0x15   :  { %p338_p9 = scmp.lt.u32.totalorder %s334_s11, %s476_s3 }
  0x17   :  { %p340_p10 = pnand %p338_p9, %p335_p8 }
  0x19   :  { %343 = shalt.err (!%p340_p10)
}
  0x1a   :  { %s344_s16 = scalar_lea.vmem %s35_s8, 2048  ;;  %p349_p12 = scmp.lt.s32.totalorder %s35_s8, %s35_s8 }
  0x1b   :  { %p345_p11 = scmp.ne.s32.totalorder %s35_s8, %s344_s16  ;;  %p350_p13 = scmp.lt.s32.totalorder %s344_s16, %s344_s16 }
  0x1d   :  { %p351_p0 = por %p350_p13, %p349_p12 }
  0x1f   :  { %p352_p1 = pnand %p351_p0, %p345_p11 }
  0x21   :  { %355 = shalt.err (!%p352_p1)
}
  0x22   :  { %40 = dma.hbm_to_vmem [thread:$0]  %s476_s3, 2048, %s35_s8, [#allocation6], %s385_s28, %s385_s28, %s386_s29  }
  0x23   :  { %378 = dma.done.wait [#allocation3], 256  }
  0x24   :  { %379 = vsyncadd [#allocation3], 4294967040 }
  0x25   :  { %380 = dma.done.wait [#allocation6], 2048  }
  0x26   :  { %381 = vsyncadd [#allocation6], 4294965248  ;;  %v49_v0 = vld [vmem:[#allocation2] sm:$0xff]  ;;  %v50_v1 = vld [vmem:[#allocation2 + $0x8] sm:$0xff]  ;;  %s388_s23 = smov [#allocation7]  }
  0x27   :  { %53 = vadd.xlane.f32.xlu0 %v49_v0  ;;  %v97_v2 = vld [vmem:[#allocation5] sm:$0xff]  ;;  %v98_v3 = vld [vmem:[#allocation5 + $0x8] sm:$0xff]  ;;  %v99_v4 = vld [vmem:[#allocation5 + $0x10] sm:$0xff]  ;;  %s202_s24 = sshll.u32 %s388_s23, 4  ;;  %s203_s24 = int_to_ptr.vmem [resolvable:$true] %s202_s24 }
  0x28   :  { %v271_v5 = vpack.c.bf16 %v98_v3, %v97_v2  ;;  %v100_v6 = vld [vmem:[#allocation5 + $0x18] sm:$0xff]  ;;  %v101_v16 = vld [vmem:[#allocation5 + $0x20] sm:$0xff]  ;;  %v102_v17 = vld [vmem:[#allocation5 + $0x28] sm:$0xff]  ;;  %p361_p3 = scmp.lt.s32.totalorder %s203_s24, %s203_s24 }
  0x29   :  { %v275_v7 = vpack.c.bf16 %v100_v6, %v99_v4  ;;  %v279_v18 = vpack.c.bf16 %v102_v17, %v101_v16  ;;  %v103_v19 = vld [vmem:[#allocation5 + $0x30] sm:$0xff]  ;;  %v104_v20 = vld [vmem:[#allocation5 + $0x38] sm:$0xff]  ;;  %v105_v22 = vld [vmem:[#allocation5 + $0x40] sm:$0xff] }
  0x2a   :  { %272 = vmatprep.subr.bf16.mxu0 %v271_v5  ;;  %v283_v21 = vpack.c.bf16 %v104_v20, %v103_v19  ;;  %v106_v23 = vld [vmem:[#allocation5 + $0x48] sm:$0xff]  ;;  %v107_v25 = vld [vmem:[#allocation5 + $0x50] sm:$0xff]  ;;  %v108_v26 = vld [vmem:[#allocation5 + $0x58] sm:$0xff] }
  0x2b   :  { %55 = vadd.xlane.f32.xlu0 %v50_v1  ;;  %274 = vmatpush3.bf16.msra.mxu0 %v271_v5  ;;  %v287_v24 = vpack.c.bf16 %v106_v23, %v105_v22  ;;  %v109_v27 = vld [vmem:[#allocation5 + $0x60] sm:$0xff]  ;;  %v291_v28 = vpack.c.bf16 %v108_v26, %v107_v25  ;;  %v110_v29 = vld [vmem:[#allocation5 + $0x68] sm:$0xff]  ;;  %v111_v31 = vld [vmem:[#allocation5 + $0x70] sm:$0xff] }
  0x2c   :  { %276 = vmatprep.subr.bf16.mxu0 %v275_v7  ;;  %v295_v30 = vpack.c.bf16 %v110_v29, %v109_v27  ;;  %v112_v32 = vld [vmem:[#allocation5 + $0x78] sm:$0xff]  ;;  %v215_v47 = vld [vmem:[%s474_s1] ss:$0 sm:$0xff]  ;;  %s356_s1 = scalar_lea.vmem %s203_s24, 256 }
  0x2d   :  { %v299_v33 = vpack.c.bf16 %v112_v32, %v111_v31  ;;  %v216_v49 = vld [vmem:[%s475_s2] ss:$0 sm:$0xff]  ;;  %p357_p2 = scmp.ne.s32.totalorder %s203_s24, %s356_s1  ;;  %p362_p4 = scmp.lt.s32.totalorder %s356_s1, %s356_s1 }
  0x2e   :  { %v217_v56 = vld [vmem:[%s477_s4] ss:$0 sm:$0xff] }
  0x2f   :  { %278 = vmatpush3.bf16.msra.mxu0 %v275_v7  ;;  %p363_p5 = por %p362_p4, %p361_p3 }
  0x30   :  { %280 = vmatprep.subr.bf16.mxu0 %v279_v18 }
  0x31   :  { %p364_p6 = pnand %p363_p5, %p357_p2 }
  0x33   :  { %282 = vmatpush3.bf16.msra.mxu0 %v279_v18 }
  0x34   :  { %284 = vmatprep.subr.bf16.mxu0 %v283_v21 }
  0x37   :  { %286 = vmatpush3.bf16.msra.mxu0 %v283_v21 }
  0x38   :  { %288 = vmatprep.subr.bf16.mxu0 %v287_v24 }
  0x3b   :  { %290 = vmatpush3.bf16.msra.mxu0 %v287_v24 }
  0x3c   :  { %292 = vmatprep.subr.bf16.mxu0 %v291_v28 }
  0x3f   :  { %294 = vmatpush3.bf16.msra.mxu0 %v291_v28 }
  0x40   :  { %296 = vmatprep.subr.bf16.mxu0 %v295_v30 }
  0x43   :  { %298 = vmatpush3.bf16.msra.mxu0 %v295_v30 }
  0x44   :  { %300 = vmatprep.subr.bf16.mxu0 %v299_v33 }
  0x47   :  { %302 = vmatpush3.bf16.msra.mxu0 %v299_v33 }
  0xb4   :  { %v54_v8 = vpop.xlane.xlu0 %53 }
  0xb5   :  { %v57_v9 = vmul.f32 0.03125, %v54_v8 }
  0xb7   :  { %v59_v10 = vsub.f32 %v49_v0, %v57_v9  ;;  %v67_v34 = vmul.f32 %v57_v9, %v57_v9 }
  0xb8   :  { %v56_v11 = vpop.xlane.xlu0 %55 }
  0xb9   :  { %v58_v12 = vmul.f32 0.03125, %v56_v11  ;;  %v61_v13 = vmul.f32 %v59_v10, %v59_v10  ;;  %v69_v36 = vmul.f32 96.0, %v67_v34 }
  0xbb   :  { %v60_v14 = vsub.f32 %v50_v1, %v58_v12  ;;  %63 = vadd.xlane.f32.xlu1 %v61_v13  ;;  %v68_v35 = vmul.f32 %v58_v12, %v58_v12 }
  0xbd   :  { %v62_v15 = vmul.f32 %v60_v14, %v60_v14  ;;  %v70_v39 = vmul.f32 96.0, %v68_v35 }
  0xbf   :  { %65 = vadd.xlane.f32.xlu1 %v62_v15 }
 0x148   :  { %v64_v37 = vpop.xlane.xlu1 %63 }
 0x149   :  { %v71_v38 = vsub.f32 %v64_v37, %v69_v36 }
 0x14b   :  { %v73_v40 = vmul.f32 0.03125, %v71_v38 }
 0x14c   :  { %v66_v41 = vpop.xlane.xlu1 %65 }
 0x14d   :  { %v75_v42 = vadd.f32 0.0001, %v73_v40  ;;  %v72_v43 = vsub.f32 %v66_v41, %v70_v39 }
 0x14f   :  { %308 = vrsqrt.f32 %v75_v42  ;;  %v74_v44 = vmul.f32 0.03125, %v72_v43 }
 0x151   :  { %v76_v45 = vadd.f32 0.0001, %v74_v44 }
 0x153   :  { %310 = vrsqrt.f32 %v76_v45 }
 0x159   :  { %v309_v46 = vpop.eup %308 }
 0x15a   :  { %v79_v48 = vmul.f32 %v309_v46, %v59_v10 }
 0x15c   :  { %v87_v50 = vmul.f32 %v215_v47, %v79_v48 }
 0x15d   :  { %v311_v51 = vpop.eup %310 }
 0x15e   :  { %v80_v52 = vmul.f32 %v311_v51, %v60_v14  ;;  %v95_v53 = vadd.f32 %v216_v49, %v87_v50 }
 0x160   :  { %v88_v54 = vmul.f32 %v215_v47, %v80_v52  ;;  %268 = vmatprep.mubr.f32.mxu0 %v95_v53 }
 0x162   :  { %v96_v55 = vadd.f32 %v216_v49, %v88_v54 }
 0x164   :  { %269 = vmatmul.mubr.f32.vlgmr.msra.gmra.mrb[0].mxu0 %v96_v55 }
 0x237   :  { %v270_v57 = vpop.f32.mrb[0].mxu0 }
 0x238   :  { %v192_v58 = vadd.f32 %v270_v57, %v217_v56  ;;  %v186_v59 = vpop.f32.mrb[1].mxu0 }
 0x239   :  { %v187_v60 = vadd.f32 %v217_v56, %v186_v59 }
 0x23a   :  { %196 = vst [vmem:[#allocation7 + $0x8] sm:$0xff] %v192_v58 }
 0x23b   :  { %195 = vst [vmem:[#allocation7] sm:$0xff] %v187_v60 }
 0x23c   :  { %367 = shalt.err (!%p364_p6)
}
 0x23d   :  { %s368_s4 = scalar_lea.hbm %s478_s5, 256 }
 0x23e   :  { %p369_p7 = scmp.ne.s32.totalorder %s478_s5, %s368_s4  ;;  %p372_p8 = scmp.lt.u32.totalorder %s368_s4, %s478_s5 }
 0x240   :  { %p374_p9 = pnand %p372_p8, %p369_p7 }
 0x242   :  { %377 = shalt.err (!%p374_p9)
}
 0x243   :  { %208 = dma.vmem_to_hbm [thread:$0]  %s203_s24, 256, %s478_s5, [#allocation4], %s385_s28, %s385_s28, %s386_s29  }
 0x244   :  { %382 = dma.done.wait [#allocation4], 256  }
 0x245   :  { %383 = vsyncadd [#allocation4], 4294967040 }
 0x246   :  { %212 = vsyncpa [#allocation3], 1 }
 0x247   :  { %213 = vsyncpa [#allocation6], 1 }
 0x248   :  { %214 = vsyncpa [#allocation4], 1 }

</bundles_post_ra>
